<compile_context>
chip_gen: v7x
topology: tpu7x:2x2x1
jax: 0.10.0
libtpu: 0.0.40
codegen_flags: <defaults>
</compile_context>

<pallas_src>
import jax
import jax.numpy as jnp
from jax.experimental import pallas as pl
from jax.experimental.pallas import tpu as pltpu


def _ann_l1_kernel(x_ref, w1_ref, b1_ref, w2_ref, b2_ref, out_ref):
    # Hidden layer: MXU matmul in the operands' native dtype, f32 accumulation.
    h = jnp.dot(x_ref[...], w1_ref[...], preferred_element_type=jnp.float32)
    # Bias + ReLU fused in f32 (native VPU path on v5e/v6e/v7x).
    h = jnp.maximum(h + b1_ref[...].astype(jnp.float32), 0.0)
    # Prediction layer: cast only the freshly-computed activations to the weight
    # dtype (no-op when weights are f32); weights themselves are never re-cast.
    p = jnp.dot(h.astype(w2_ref.dtype), w2_ref[...], preferred_element_type=jnp.float32)
    out_ref[...] = (p + b2_ref[...].astype(jnp.float32)).astype(out_ref.dtype)


def _choose_batch_tile(batch, tile_b, min_steps=4):
    """Largest 8-multiple tile <= tile_b that still leaves >= min_steps grid steps."""
    if batch <= 8:
        return batch
    tb = min(tile_b, batch)
    # Keep the grid >= min_steps long (when batch allows) so megacore sharding
    # ("parallel" batch axis) and the input/output double-buffering stay engaged.
    tb = min(tb, max(pl.cdiv(batch, min_steps), 8))
    return max(8, (tb // 8) * 8)


def _physical_vmem_bytes():
    try:
        return int(pltpu.get_tpu_info().vmem_capacity_bytes)
    except Exception:  # CPU tracing / older runtimes: assume v5e/v6e-sized VMEM.
        return 128 << 20


def ann_l1_forward(x, w1, b1, w2, b2, *, tile_b=4096):
    """Fused MLP forward.

    x: (B, F); w1: (F, H); b1: (1, H); w2: (H, O); b2: (1, O).
    Pass f32 params/activations for parity with the torch module, or bf16 (converted
    once, outside this call) to halve the dominant HBM traffic.
    """
    B, F = x.shape
    H = w1.shape[1]
    O = w2.shape[1]

    tb = _choose_batch_tile(B, tile_b)
    grid = (pl.cdiv(B, tb),)

    x_it = jnp.dtype(x.dtype).itemsize
    w_it = jnp.dtype(w1.dtype).itemsize
    b_it = jnp.dtype(b1.dtype).itemsize
    o_it = x_it  # output dtype follows x

    # VMEM budget: double-buffered activation/output tiles + (double-buffered, but
    # constant-index so effectively resident) weights + f32 temporaries, with 2x
    # headroom.  Cap generation-aware: <= ~3/4 of physical VMEM, never above 96 MiB.
    vmem_est = (
        2 * tb * F * x_it
        + 2 * tb * O * o_it
        + 2 * (F * H + H * O) * w_it
        + 2 * (H + O) * b_it
        + 4 * tb * H * 4
    )
    vmem_cap = min((_physical_vmem_bytes() * 3) // 4, 96 << 20)
    vmem_limit = int(min(max(2 * vmem_est, 32 << 20), vmem_cap))

    cost = pl.CostEstimate(
        flops=2 * B * (F * H + H * O) + B * (2 * H + O),
        transcendentals=0,
        bytes_accessed=(
            B * F * x_it + B * O * o_it + (F * H + H * O) * w_it + (H + O) * b_it
        ),
    )

    return pl.pallas_call(
        _ann_l1_kernel,
        out_shape=jax.ShapeDtypeStruct((B, O), x.dtype),
        grid=grid,
        in_specs=[
            pl.BlockSpec((tb, F), lambda i: (i, 0)),   # batch-tiled activations
            pl.BlockSpec((F, H), lambda i: (0, 0)),    # weights stay resident in VMEM
            pl.BlockSpec((1, H), lambda i: (0, 0)),
            pl.BlockSpec((H, O), lambda i: (0, 0)),
            pl.BlockSpec((1, O), lambda i: (0, 0)),
        ],
        out_specs=pl.BlockSpec((tb, O), lambda i: (i, 0)),
        compiler_params=pltpu.CompilerParams(
            dimension_semantics=("parallel",),
            vmem_limit_bytes=vmem_limit,
        ),
        cost_estimate=cost,
    )(x, w1, b1, w2, b2)


def init_params(key, n_feature, n_hidden, n_output):
    """Deterministic init mirroring torch.nn.Linear (uniform +/- 1/sqrt(fan_in))."""
    k1, k2, k3, k4 = jax.random.split(key, 4)
    bound1 = 1.0 / jnp.sqrt(n_feature)
    bound2 = 1.0 / jnp.sqrt(n_hidden)
    # Stored pre-transposed as (in, out) so the kernel computes x @ W.
    w1 = jax.random.uniform(k1, (n_feature, n_hidden), jnp.float32, -bound1, bound1)
    b1 = jax.random.uniform(k2, (1, n_hidden), jnp.float32, -bound1, bound1)
    w2 = jax.random.uniform(k3, (n_hidden, n_output), jnp.float32, -bound2, bound2)
    b2 = jax.random.uniform(k4, (1, n_output), jnp.float32, -bound2, bound2)
    return w1, b1, w2, b2


def _reference(x, w1, b1, w2, b2):
    return jnp.maximum(x @ w1 + b1, 0.0) @ w2 + b2


if __name__ == "__main__":
    key = jax.random.PRNGKey(0)
    kx, kp = jax.random.split(key)
    batch, n_feature, n_hidden, n_output = 64, 32, 64, 16

    x = jax.random.normal(kx, (batch, n_feature), dtype=jnp.float32)
    w1, b1, w2, b2 = init_params(kp, n_feature, n_hidden, n_output)

    # --- f32 path (parity with the torch module); tile chooser caps the 4096 default
    # --- down so the grid still has 4 steps at batch=64.
    out = ann_l1_forward(x, w1, b1, w2, b2)
    out = jax.block_until_ready(out)
    assert out.shape == (batch, n_output)
    ref = _reference(x, w1, b1, w2, b2)
    assert jnp.allclose(out, ref, atol=1e-2, rtol=1e-2), "f32 path mismatch"

    # --- ragged batch (B not a multiple of the tile): last grid step is a partial
    # --- block, padded rows are clipped on writeback.
    b_ragged = 52
    x_r = jax.random.normal(jax.random.PRNGKey(2), (b_ragged, n_feature), jnp.float32)
    out_r = jax.block_until_ready(ann_l1_forward(x_r, w1, b1, w2, b2, tile_b=16))
    assert out_r.shape == (b_ragged, n_output)
    assert jnp.allclose(out_r, _reference(x_r, w1, b1, w2, b2), atol=1e-2, rtol=1e-2), \
        "ragged-B path mismatch"

    # --- bf16 path: params/activations converted to bf16 ONCE outside the grid
    # --- (halves the dominant HBM traffic; no per-step casts inside the kernel).
    xb = x.astype(jnp.bfloat16)
    w1b, b1b = w1.astype(jnp.bfloat16), b1.astype(jnp.bfloat16)
    w2b, b2b = w2.astype(jnp.bfloat16), b2.astype(jnp.bfloat16)
    out_bf = jax.block_until_ready(ann_l1_forward(xb, w1b, b1b, w2b, b2b))
    ref_bf = _reference(
        xb.astype(jnp.float32), w1b.astype(jnp.float32), b1b.astype(jnp.float32),
        w2b.astype(jnp.float32), b2b.astype(jnp.float32),
    )
    assert jnp.allclose(out_bf.astype(jnp.float32), ref_bf, atol=5e-2, rtol=5e-2), \
        "bf16 path mismatch"

    print("KERNEL_OK")
</pallas_src>

<mosaic_0001>
module attributes {stable_mosaic.version = 11 : i64} {
  func.func @_ann_l1_kernel(%arg0: i32, %arg1: memref<16x32xf32, #tpu.memory_space<vmem>>, %arg2: memref<32x64xf32, #tpu.memory_space<vmem>>, %arg3: memref<1x64xf32, #tpu.memory_space<vmem>>, %arg4: memref<64x16xf32, #tpu.memory_space<vmem>>, %arg5: memref<1x16xf32, #tpu.memory_space<vmem>>, %arg6: memref<16x16xf32, #tpu.memory_space<vmem>>) attributes {dimension_semantics = [#tpu.dimension_semantics<parallel>], iteration_bounds = array<i64: 4>, scalar_prefetch = 0 : i64, scratch_operands = 0 : i64, tpu.core_type = #tpu.core_type<tc>, window_params = [{transform_indices = @transform_0, window_bounds = array<i64: 16, 32>}, {pipeline_mode = #tpu.pipeline_mode<synchronous>, transform_indices = @transform_1, window_bounds = array<i64: 32, 64>}, {pipeline_mode = #tpu.pipeline_mode<synchronous>, transform_indices = @transform_2, window_bounds = array<i64: 1, 64>}, {pipeline_mode = #tpu.pipeline_mode<synchronous>, transform_indices = @transform_3, window_bounds = array<i64: 64, 16>}, {pipeline_mode = #tpu.pipeline_mode<synchronous>, transform_indices = @transform_4, window_bounds = array<i64: 1, 16>}, {transform_indices = @transform_5, window_bounds = array<i64: 16, 16>}]} {
    %c0 = arith.constant 0 : index
    %c0_0 = arith.constant 0 : index
    %0 = vector.load %arg1[%c0, %c0_0] : memref<16x32xf32, #tpu.memory_space<vmem>>, vector<16x32xf32>
    %c0_1 = arith.constant 0 : index
    %c0_2 = arith.constant 0 : index
    %1 = vector.load %arg2[%c0_1, %c0_2] : memref<32x64xf32, #tpu.memory_space<vmem>>, vector<32x64xf32>
    %cst = arith.constant dense<0.000000e+00> : vector<16x64xf32>
    %2 = tpu.matmul %0, %1, %cst {dimension_numbers = #tpu.dot_dimension_numbers<[1], [0], [0], [1], [0, 0, 1, 1], [], []>} : vector<16x32xf32>, vector<32x64xf32>, vector<16x64xf32> -> vector<16x64xf32>
    %c0_3 = arith.constant 0 : index
    %c0_4 = arith.constant 0 : index
    %3 = vector.load %arg3[%c0_3, %c0_4] : memref<1x64xf32, #tpu.memory_space<vmem>>, vector<1x64xf32>
    %4 = vector.broadcast %3 : vector<1x64xf32> to vector<16x64xf32>
    %5 = arith.addf %2, %4 : vector<16x64xf32>
    %cst_5 = arith.constant 0.000000e+00 : f32
    %6 = vector.broadcast %cst_5 : f32 to vector<16x64xf32>
    %7 = arith.maximumf %5, %6 : vector<16x64xf32>
    %c0_6 = arith.constant 0 : index
    %c0_7 = arith.constant 0 : index
    %8 = vector.load %arg4[%c0_6, %c0_7] : memref<64x16xf32, #tpu.memory_space<vmem>>, vector<64x16xf32>
    %cst_8 = arith.constant dense<0.000000e+00> : vector<16x16xf32>
    %9 = tpu.matmul %7, %8, %cst_8 {dimension_numbers = #tpu.dot_dimension_numbers<[1], [0], [0], [1], [0, 0, 1, 1], [], []>} : vector<16x64xf32>, vector<64x16xf32>, vector<16x16xf32> -> vector<16x16xf32>
    %c0_9 = arith.constant 0 : index
    %c0_10 = arith.constant 0 : index
    %10 = vector.load %arg5[%c0_9, %c0_10] : memref<1x16xf32, #tpu.memory_space<vmem>>, vector<1x16xf32>
    %11 = vector.broadcast %10 : vector<1x16xf32> to vector<16x16xf32>
    %12 = arith.addf %9, %11 : vector<16x16xf32>
    %c0_11 = arith.constant 0 : index
    %c0_12 = arith.constant 0 : index
    %13 = vector.load %arg6[%c0_11, %c0_12] : memref<16x16xf32, #tpu.memory_space<vmem>>, vector<16x16xf32>
    tpu.vector_store %arg6[%c0_11, %c0_12], %12 {strides = array<i32>} : memref<16x16xf32, #tpu.memory_space<vmem>>, vector<16x16xf32>,
    return
  }
  func.func @transform_0(%arg0: i32) -> (i32, i32) {
    %c0_i32 = arith.constant 0 : i32
    %c0_i32_0 = arith.constant 0 : i32
    return %arg0, %c0_i32 : i32, i32
  }
  func.func @transform_1(%arg0: i32) -> (i32, i32) {
    %c0_i32 = arith.constant 0 : i32
    %c0_i32_0 = arith.constant 0 : i32
    %c0_i32_1 = arith.constant 0 : i32
    return %c0_i32, %c0_i32_0 : i32, i32
  }
  func.func @transform_2(%arg0: i32) -> (i32, i32) {
    %c0_i32 = arith.constant 0 : i32
    %c0_i32_0 = arith.constant 0 : i32
    %c0_i32_1 = arith.constant 0 : i32
    return %c0_i32, %c0_i32_0 : i32, i32
  }
  func.func @transform_3(%arg0: i32) -> (i32, i32) {
    %c0_i32 = arith.constant 0 : i32
    %c0_i32_0 = arith.constant 0 : i32
    %c0_i32_1 = arith.constant 0 : i32
    return %c0_i32, %c0_i32_0 : i32, i32
  }
  func.func @transform_4(%arg0: i32) -> (i32, i32) {
    %c0_i32 = arith.constant 0 : i32
    %c0_i32_0 = arith.constant 0 : i32
    %c0_i32_1 = arith.constant 0 : i32
    return %c0_i32, %c0_i32_0 : i32, i32
  }
  func.func @transform_5(%arg0: i32) -> (i32, i32) {
    %c0_i32 = arith.constant 0 : i32
    %c0_i32_0 = arith.constant 0 : i32
    return %arg0, %c0_i32 : i32, i32
  }
}

</mosaic_0001>

<bundles_post_ra>
// kernel: tpu_custom_call.1
= control target key start
LH: loop header
LB: loop body
LE: loop exit
PB: predicated region body
PF: predicated region fallthrough
CT: control target
= control target key end

     0   :  { %s614_s18 = smov 0   ;;  %s680_s0 = inlined_call_operand.vmem [shape: f32[64,32], index: 0, kind: input, shape index: {}]   ;;  %s681_s1 = inlined_call_operand.vmem [shape: f32[32,64], index: 1, kind: input, shape index: {}]   ;;  %s682_s2 = inlined_call_operand.vmem [shape: f32[1,64], index: 2, kind: input, shape index: {}]   ;;  %s683_s3 = inlined_call_operand.vmem [shape: f32[64,16], index: 3, kind: input, shape index: {}]   ;;  %s684_s4 = inlined_call_operand.vmem [shape: f32[1,16], index: 4, kind: input, shape index: {}]   ;;  %s685_s5 = inlined_call_operand.vmem [shape: f32[64,16], index: 5, kind: output, shape index: {}]  }
   0x1 LB: > { %s481_s19 = sadd.s32 4294967295, %s582_s18   ;;  %p485_p0 = scmp.ge.s32.totalorder %s582_s18, 1  ;;  %s582_s18 = sphi %s614_s18, %s15_s18  }
   0x2   : > { %p188_p1 = scmp.lt.s32.totalorder %s582_s18, 5 }
   0x4   : > { %p189_p2 = pnand %p485_p0, %p188_p1 }
   0x5   : > { %v230_v0 = vld [vmem:[%s681_s1] sm:$0xff] (!%p189_p2)  ;;  %v231_v1 = vld [vmem:[%s681_s1 + $0x8] sm:$0xff] (!%p189_p2)  ;;  %v232_v2 = vld [vmem:[%s681_s1 + $0x10] sm:$0xff] (!%p189_p2)  ;;  %s486_s26 = sshll.u32 (!%p189_p2), %s481_s19, 1  ;;  %vm241_vm0 = vcmask (!%p189_p2), 261120   ;;  %vm340_vm1 = vcmask (!%p189_p2), 523264  }
   0x6   : > { %192 = sbr.rel (%p189_p2) target bundleno = 452 (0x1c4), region = 40  ;;  %v544_v3 = vpack.c.bf16 (!%p189_p2), %v231_v1, %v230_v0  ;;  %v233_v4 = vld [vmem:[%s681_s1 + $0x18] sm:$0xff] (!%p189_p2)  ;;  %p217_p3 = scmp.lt.s32.totalorder (!%p189_p2), %s486_s26, 7  ;;  %v325_v5 = vld [vmem:[%s683_s3] sm:$0xff] (!%p189_p2)  ;;  %v326_v6 = vld [vmem:[%s683_s3 + $0x8] sm:$0xff] (!%p189_p2)  ;;  %vm422_vm2 = vcmask (!%p189_p2), 130048  }
   0x7   : > { %v548_v7 = vpack.c.bf16 (!%p189_p2), %v233_v4, %v232_v2  ;;  %v552_v8 = vpack.c.bf16 (!%p189_p2), %v326_v6, %v325_v5  ;;  %v327_v9 = vld [vmem:[%s683_s3 + $0x10] sm:$0xff] (!%p189_p2)  ;;  %v328_v10 = vld [vmem:[%s683_s3 + $0x18] sm:$0xff] (!%p189_p2)  ;;  %v329_v12 = vld [vmem:[%s683_s3 + $0x20] sm:$0xff] (!%p189_p2) }
   0x8   : > { %545 = vmatprep.subr.bf16.mxu0 (!%p189_p2), %v544_v3  ;;  %v556_v11 = vpack.c.bf16 (!%p189_p2), %v328_v10, %v327_v9  ;;  %v330_v13 = vld [vmem:[%s683_s3 + $0x28] sm:$0xff] (!%p189_p2)  ;;  %v331_v17 = vld [vmem:[%s683_s3 + $0x30] sm:$0xff] (!%p189_p2)  ;;  %v332_v18 = vld [vmem:[%s683_s3 + $0x38] sm:$0xff] (!%p189_p2) }
   0x9   : > { %547 = vmatpush3.bf16.msra.mxu0 (!%p189_p2), %v544_v3  ;;  %553 = vmatprep.subr.bf16.mxu1 (!%p189_p2), %v552_v8  ;;  %v560_v14 = vpack.c.bf16 (!%p189_p2), %v330_v13, %v329_v12  ;;  %v564_v19 = vpack.c.bf16 (!%p189_p2), %v332_v18, %v331_v17  ;;  %v490_v20 = vld [vmem:[%s682_s2] ss:$0 sm:$0xff] (!%p189_p2) }
   0xa   : > { %549 = vmatprep.subr.bf16.mxu0 (!%p189_p2), %v548_v7  ;;  %555 = vmatpush3.bf16.msra.mxu1 (!%p189_p2), %v552_v8  ;;  %v493_v27 = vld [vmem:[%s684_s4] ss:$0 sm:$0xff] (!%p189_p2) }
   0xb   : > { %557 = vmatprep.subr.bf16.mxu1 (!%p189_p2), %v556_v11 }
   0xd   : > { %s687_s26 = smov (!%p217_p3, %s486_s26), 7  ;;  %551 = vmatpush3.bf16.msra.mxu0 %v548_v7 }
   0xe   : > { %s487_s16 = sshll.u32 %s687_s26, 3  ;;  %559 = vmatpush3.bf16.msra.mxu1 %v556_v11 }
   0xf   : > { %s220_s20 = scalar_lea.vmem %s680_s0, %s487_s16  ;;  %561 = vmatprep.subr.bf16.mxu1 %v560_v14  ;;  %s226_s7 = scalar_lea.vmem %s685_s5, %s487_s16 }
  0x10   : > { %v228_v15 = vld [vmem:[%s220_s20] sm:$0xff]  ;;  %v229_v16 = vld [vmem:[%s220_s20 + $0x8] sm:$0xff] }
  0x11   : > { %522 = vmatprep.mubr.msk.f32.mxu0 %vm241_vm0, %v228_v15 }
  0x12   : > { %523 = vmatmul.mubr.msk.f32.vlgmr.msra.gmra.mrb[0].mxu0 %vm241_vm0, %v229_v16  ;;  %563 = vmatpush3.bf16.msra.mxu1 %v560_v14 }
  0x13   : > { %565 = vmatprep.subr.bf16.mxu1 %v564_v19 }
  0x16   : > { %567 = vmatpush3.bf16.msra.mxu1 %v564_v19 }
  0xe5   : > { %v524_v21 = vpop.f32.mrb[0].mxu0 }
  0xe6   : > { %v320_v22 = vadd.f32 %v524_v21, %v490_v20  ;;  %v314_v23 = vpop.f32.mrb[1].mxu0 }
  0xe7   : > { %v315_v24 = vadd.f32 %v490_v20, %v314_v23 }
  0xe8   : > { %v324_v26 = vmax.f32 %v320_v22, 0.0 }
  0xe9   : > { %v323_v25 = vmax.f32 %v315_v24, 0.0 }
  0xeb   : > { %541 = vmatprep.mubr.msk.f32.mxu1 %vm340_vm1, %v323_v25 }
  0xec   : > { %542 = vmatmul.mubr.msk.f32.vlgmr.msra.gmra.mrb[0].mxu1 %vm340_vm1, %v324_v26 }
 0x1bf   : > { %v543_v28 = vpop.f32.mrb[0].mxu1 }
 0x1c0   : > { %v413_v29 = vpop.f32.mrb[1].mxu1  ;;  %v419_v31 = vadd.f32 %v543_v28, %v493_v27 }
 0x1c1   : > { %v414_v30 = vadd.f32 %v493_v27, %v413_v29 }
 0x1c2   : > { %424 = vst.msk [vmem:[%s226_s7 + $0x8] sm:$0xff] %vm422_vm2, %v419_v31 }
 0x1c3   : > { %423 = vst.msk [vmem:[%s226_s7] sm:$0xff] %vm422_vm2, %v414_v30 }
 0x1c4 PF: > { %s15_s18 = sadd.s32 1, %s582_s18  }
 0x1c5   : > { %p12_p4 = scmp.ge.s32.totalorder %s15_s18, 6  }
 0x1c7   :  { %14 = sbr.rel (!%p12_p4) target bundleno = 1 (0x1), region = 70 }

</bundles_post_ra>
